<compile_context>
chip_gen: v7x
topology: tpu7x:2x2x1
jax: 0.10.0
libtpu: 0.0.40
codegen_flags: <defaults>
</compile_context>

<pallas_src>
import jax
import jax.numpy as jnp
from jax.experimental import pallas as pl
from jax.experimental.pallas import tpu as pltpu

_LANES = 128
_SUBLANES = 8
_MAX_TILE_ROWS = 2048  # 2048 x 128 f32 = 1 MiB per input block


def _make_kernel(tile_rows, n_valid, grid):
    """Build the per-block partial-sum kernel (tile_rows, n_valid, grid static)."""
    tile_elems = tile_rows * _LANES
    pad = grid * tile_elems - n_valid

    def kernel(x_ref, t_ref, o_ref):
        x = x_ref[...]
        t = t_ref[...]

        s = jax.nn.sigmoid(x)  # probabilities used by the dice term
        z = s                  # quirk: same values act as "logits" for the BCE term

        # BCEWithLogitsLoss(pos_weight=p) per element:
        #   p*t*softplus(-z) + (1-t)*softplus(z)
        # with softplus(z) = z + softplus(-z) (one exp + one log per element):
        #   = (1-t)*z + (1 - 0.7*t)*softplus(-z)
        sp_neg = jnp.log1p(jnp.exp(-z))  # z in (0,1): no overflow concerns
        bce = (1.0 - t) * z + (1.0 - 0.7 * t) * sp_neg

        def emit(s_v, t_v, bce_v):
            def fold(v):
                # (tile_rows, 128) -> (tile_rows/8, 8, 128); sum over leading
                # axis is pure per-vreg VPU adds (no cross-lane work here).
                return jnp.sum(v.reshape(-1, _SUBLANES, _LANES), axis=0)

            o_ref[0, 0] = fold(s_v * t_v)  # dice intersection partial
            o_ref[0, 1] = fold(s_v)        # sum(sigmoid(x)) partial
            o_ref[0, 2] = fold(t_v)        # sum(targets) partial
            o_ref[0, 3] = fold(bce_v)      # weighted BCE sum partial

        if pad == 0:
            emit(s, t, bce)
        else:
            i = pl.program_id(0)
            last = grid - 1

            @pl.when(i != last)
            def _():
                emit(s, t, bce)

            @pl.when(i == last)
            def _():
                # Only the final block contains padded elements.
                row = jax.lax.broadcasted_iota(jnp.int32, (tile_rows, _LANES), 0)
                lane = jax.lax.broadcasted_iota(jnp.int32, (tile_rows, _LANES), 1)
                idx = last * tile_elems + row * _LANES + lane
                m = (idx < n_valid).astype(jnp.float32)
                emit(s * m, t * m, bce * m)

    return kernel


def dice_weighted_bce03_loss(inputs, targets, smooth=1.0):
    """JAX/Pallas equivalent of DiceWeightedBCE03Loss.forward."""
    n = inputs.size
    x = inputs.reshape(-1).astype(jnp.float32)
    t = targets.reshape(-1).astype(jnp.float32)

    # Pick the largest block that fits comfortably in VMEM on all generations,
    # clamped down for small inputs.
    rows_needed = -(-n // _LANES)
    tile_rows = min(_MAX_TILE_ROWS, -(-rows_needed // _SUBLANES) * _SUBLANES)
    tile_elems = tile_rows * _LANES
    grid = -(-n // tile_elems)
    n_pad = grid * tile_elems
    pad = n_pad - n
    if pad:
        x = jnp.pad(x, (0, pad))
        t = jnp.pad(t, (0, pad))

    rows = n_pad // _LANES
    x2 = x.reshape(rows, _LANES)
    t2 = t.reshape(rows, _LANES)

    tile_spec = pl.BlockSpec((tile_rows, _LANES), lambda i: (i, 0))
    out_spec = pl.BlockSpec((1, 4, _SUBLANES, _LANES), lambda i: (i, 0, 0, 0))

    partials = pl.pallas_call(
        _make_kernel(tile_rows, n, grid),
        out_shape=jax.ShapeDtypeStruct((grid, 4, _SUBLANES, _LANES), jnp.float32),
        grid_spec=pltpu.PrefetchScalarGridSpec(
            num_scalar_prefetch=0,
            grid=(grid,),
            in_specs=[tile_spec, tile_spec],
            out_specs=out_spec,
        ),
        # Independent per-block partials -> "parallel" (v7x uses both TCs).
        compiler_params=pltpu.CompilerParams(
            dimension_semantics=("parallel",)),
    )(x2, t2)

    sums = jnp.sum(partials, axis=(0, 2, 3))  # (4,) — tiny final reduction in JAX
    intersection = sums[0]
    s_sum = sums[1]
    t_sum = sums[2]
    bce_sum = sums[3]

    dice = 1.0 - (2.0 * intersection + smooth) / (s_sum + t_sum + smooth)
    bce = bce_sum / jnp.float32(n)  # mean reduction over original (unpadded) n
    return bce + dice


def _reference_loss(inputs, targets, smooth=1.0):
    """Plain-JAX reference matching the PyTorch forward exactly."""
    s = jax.nn.sigmoid(inputs.astype(jnp.float32)).reshape(-1)
    t = targets.astype(jnp.float32).reshape(-1)
    intersection = jnp.sum(s * t)
    dice = 1.0 - (2.0 * intersection + smooth) / (jnp.sum(s) + jnp.sum(t) + smooth)
    z = s
    bce = jnp.mean(0.3 * t * jnp.logaddexp(0.0, -z)
                   + (1.0 - t) * jnp.logaddexp(0.0, z))
    return bce + dice


if __name__ == "__main__":
    key = jax.random.PRNGKey(0)
    k_x, k_t, k_x2, k_t2 = jax.random.split(key, 4)

    # Binary segmentation shapes: (batch, 1, H, W).
    x = jax.random.normal(k_x, (2, 1, 16, 16), dtype=jnp.float32)
    targets = (jax.random.uniform(k_t, (2, 1, 16, 16)) > 0.5).astype(jnp.float32)

    loss = jax.block_until_ready(dice_weighted_bce03_loss(x, targets))
    ref = jax.block_until_ready(_reference_loss(x, targets))
    assert jnp.allclose(loss, ref, rtol=1e-5, atol=1e-5), (loss, ref)

    # Larger case exercises the multi-block parallel path (grid > 1, no pad).
    xb = jax.random.normal(k_x2, (2, 1, 512, 512), dtype=jnp.float32)
    tb = (jax.random.uniform(k_t2, (2, 1, 512, 512)) > 0.5).astype(jnp.float32)
    loss_b = jax.block_until_ready(dice_weighted_bce03_loss(xb, tb))
    ref_b = jax.block_until_ready(_reference_loss(xb, tb))
    assert jnp.allclose(loss_b, ref_b, rtol=1e-5, atol=1e-5), (loss_b, ref_b)

    print("KERNEL_OK")
</pallas_src>

<mosaic_0001>
module attributes {stable_mosaic.version = 11 : i64} {
  func.func @kernel(%arg0: i32, %arg1: memref<8x128xf32, #tpu.memory_space<vmem>>, %arg2: memref<8x128xf32, #tpu.memory_space<vmem>>, %arg3: memref<1x4x8x128xf32, #tpu.memory_space<vmem>>) attributes {dimension_semantics = [#tpu.dimension_semantics<parallel>], iteration_bounds = array<i64: 1>, scalar_prefetch = 0 : i64, scratch_operands = 0 : i64, tpu.core_type = #tpu.core_type<tc>, window_params = [{transform_indices = @transform_0, window_bounds = array<i64: 8, 128>}, {transform_indices = @transform_1, window_bounds = array<i64: 8, 128>}, {transform_indices = @transform_2, window_bounds = array<i64: 1, 4, 8, 128>}]} {
    %c0 = arith.constant 0 : index
    %c0_0 = arith.constant 0 : index
    %0 = vector.load %arg1[%c0, %c0_0] : memref<8x128xf32, #tpu.memory_space<vmem>>, vector<8x128xf32>
    %c0_1 = arith.constant 0 : index
    %c0_2 = arith.constant 0 : index
    %1 = vector.load %arg2[%c0_1, %c0_2] : memref<8x128xf32, #tpu.memory_space<vmem>>, vector<8x128xf32>
    %2 = arith.negf %0 : vector<8x128xf32>
    %3 = math.exp %2 : vector<8x128xf32>
    %cst = arith.constant 1.000000e+00 : f32
    %4 = vector.broadcast %cst : f32 to vector<8x128xf32>
    %5 = arith.addf %4, %3 : vector<8x128xf32>
    %6 = arith.divf %4, %5 : vector<8x128xf32>
    %cst_3 = arith.constant 0.000000e+00 : f32
    %7 = vector.broadcast %cst_3 : f32 to vector<8x128xf32>
    %8 = arith.subf %7, %6 : vector<8x128xf32>
    %9 = math.exp %8 : vector<8x128xf32>
    %10 = math.log1p %9 : vector<8x128xf32>
    %cst_4 = arith.constant 1.000000e+00 : f32
    %11 = vector.broadcast %cst_4 : f32 to vector<8x128xf32>
    %12 = arith.subf %11, %1 : vector<8x128xf32>
    %13 = arith.mulf %12, %6 : vector<8x128xf32>
    %cst_5 = arith.constant 0.699999988 : f32
    %14 = vector.broadcast %cst_5 : f32 to vector<8x128xf32>
    %15 = arith.mulf %14, %1 : vector<8x128xf32>
    %cst_6 = arith.constant 1.000000e+00 : f32
    %16 = vector.broadcast %cst_6 : f32 to vector<8x128xf32>
    %17 = arith.subf %16, %15 : vector<8x128xf32>
    %18 = arith.mulf %17, %10 : vector<8x128xf32>
    %19 = arith.addf %13, %18 : vector<8x128xf32>
    %c0_i32 = arith.constant 0 : i32
    %20 = arith.cmpi ne, %arg0, %c0_i32 : i32
    %21 = arith.extui %20 : i1 to i32
    %c0_i32_7 = arith.constant 0 : i32
    %22 = arith.cmpi ne, %21, %c0_i32_7 : i32
    scf.if %22 {
      %26 = arith.mulf %6, %1 : vector<8x128xf32>
      %27 = vector.shape_cast %26 : vector<8x128xf32> to vector<1x8x128xf32>
      %cst_10 = arith.constant dense<0.000000e+00> : vector<8x128xf32>
      %28 = vector.multi_reduction <add>, %27, %cst_10 [0] : vector<1x8x128xf32> to vector<8x128xf32>
      %c0_11 = arith.constant 0 : index
      %c0_12 = arith.constant 0 : index
      %c0_13 = arith.constant 0 : index
      %c0_14 = arith.constant 0 : index
      %29 = vector.load %arg3[%c0_11, %c0_12, %c0_13, %c0_14] : memref<1x4x8x128xf32, #tpu.memory_space<vmem>>, vector<1x1x8x128xf32>
      %30 = vector.shape_cast %29 : vector<1x1x8x128xf32> to vector<8x128xf32>
      %31 = vector.shape_cast %28 : vector<8x128xf32> to vector<1x1x8x128xf32>
      tpu.vector_store %arg3[%c0_11, %c0_12, %c0_13, %c0_14], %31 {strides = array<i32>} : memref<1x4x8x128xf32, #tpu.memory_space<vmem>>, vector<1x1x8x128xf32>,
      %32 = vector.shape_cast %6 : vector<8x128xf32> to vector<1x8x128xf32>
      %cst_15 = arith.constant dense<0.000000e+00> : vector<8x128xf32>
      %33 = vector.multi_reduction <add>, %32, %cst_15 [0] : vector<1x8x128xf32> to vector<8x128xf32>
      %c0_16 = arith.constant 0 : index
      %c1 = arith.constant 1 : index
      %c0_17 = arith.constant 0 : index
      %c0_18 = arith.constant 0 : index
      %34 = vector.load %arg3[%c0_16, %c1, %c0_17, %c0_18] : memref<1x4x8x128xf32, #tpu.memory_space<vmem>>, vector<1x1x8x128xf32>
      %35 = vector.shape_cast %34 : vector<1x1x8x128xf32> to vector<8x128xf32>
      %36 = vector.shape_cast %33 : vector<8x128xf32> to vector<1x1x8x128xf32>
      tpu.vector_store %arg3[%c0_16, %c1, %c0_17, %c0_18], %36 {strides = array<i32>} : memref<1x4x8x128xf32, #tpu.memory_space<vmem>>, vector<1x1x8x128xf32>,
      %37 = vector.shape_cast %1 : vector<8x128xf32> to vector<1x8x128xf32>
      %cst_19 = arith.constant dense<0.000000e+00> : vector<8x128xf32>
      %38 = vector.multi_reduction <add>, %37, %cst_19 [0] : vector<1x8x128xf32> to vector<8x128xf32>
      %c0_20 = arith.constant 0 : index
      %c2 = arith.constant 2 : index
      %c0_21 = arith.constant 0 : index
      %c0_22 = arith.constant 0 : index
      %39 = vector.load %arg3[%c0_20, %c2, %c0_21, %c0_22] : memref<1x4x8x128xf32, #tpu.memory_space<vmem>>, vector<1x1x8x128xf32>
      %40 = vector.shape_cast %39 : vector<1x1x8x128xf32> to vector<8x128xf32>
      %41 = vector.shape_cast %38 : vector<8x128xf32> to vector<1x1x8x128xf32>
      tpu.vector_store %arg3[%c0_20, %c2, %c0_21, %c0_22], %41 {strides = array<i32>} : memref<1x4x8x128xf32, #tpu.memory_space<vmem>>, vector<1x1x8x128xf32>,
      %42 = vector.shape_cast %19 : vector<8x128xf32> to vector<1x8x128xf32>
      %cst_23 = arith.constant dense<0.000000e+00> : vector<8x128xf32>
      %43 = vector.multi_reduction <add>, %42, %cst_23 [0] : vector<1x8x128xf32> to vector<8x128xf32>
      %c0_24 = arith.constant 0 : index
      %c3 = arith.constant 3 : index
      %c0_25 = arith.constant 0 : index
      %c0_26 = arith.constant 0 : index
      %44 = vector.load %arg3[%c0_24, %c3, %c0_25, %c0_26] : memref<1x4x8x128xf32, #tpu.memory_space<vmem>>, vector<1x1x8x128xf32>
      %45 = vector.shape_cast %44 : vector<1x1x8x128xf32> to vector<8x128xf32>
      %46 = vector.shape_cast %43 : vector<8x128xf32> to vector<1x1x8x128xf32>
      tpu.vector_store %arg3[%c0_24, %c3, %c0_25, %c0_26], %46 {strides = array<i32>} : memref<1x4x8x128xf32, #tpu.memory_space<vmem>>, vector<1x1x8x128xf32>,
    } else {
    }
    %c0_i32_8 = arith.constant 0 : i32
    %23 = arith.cmpi eq, %arg0, %c0_i32_8 : i32
    %24 = arith.extui %23 : i1 to i32
    %c0_i32_9 = arith.constant 0 : i32
    %25 = arith.cmpi ne, %24, %c0_i32_9 : i32
    scf.if %25 {
      %26 = tpu.iota {dimensions = array<i32: 0>} : vector<8x128xi32>
      %27 = tpu.iota {dimensions = array<i32: 1>} : vector<8x128xi32>
      %c128_i32 = arith.constant 128 : i32
      %28 = vector.broadcast %c128_i32 : i32 to vector<8x128xi32>
      %29 = arith.muli %26, %28 : vector<8x128xi32>
      %c0_i32_10 = arith.constant 0 : i32
      %30 = vector.broadcast %c0_i32_10 : i32 to vector<8x128xi32>
      %31 = arith.addi %30, %29 : vector<8x128xi32>
      %32 = arith.addi %31, %27 : vector<8x128xi32>
      %c512_i32 = arith.constant 512 : i32
      %33 = vector.broadcast %c512_i32 : i32 to vector<8x128xi32>
      %34 = arith.cmpi slt, %32, %33 : vector<8x128xi32>
      %35 = arith.extui %34 : vector<8x128xi1> to vector<8x128xi32>
      %36 = arith.sitofp %35 : vector<8x128xi32> to vector<8x128xf32>
      %37 = arith.mulf %6, %36 : vector<8x128xf32>
      %38 = arith.mulf %1, %36 : vector<8x128xf32>
      %39 = arith.mulf %19, %36 : vector<8x128xf32>
      %40 = arith.mulf %37, %38 : vector<8x128xf32>
      %41 = vector.shape_cast %40 : vector<8x128xf32> to vector<1x8x128xf32>
      %cst_11 = arith.constant dense<0.000000e+00> : vector<8x128xf32>
      %42 = vector.multi_reduction <add>, %41, %cst_11 [0] : vector<1x8x128xf32> to vector<8x128xf32>
      %c0_12 = arith.constant 0 : index
      %c0_13 = arith.constant 0 : index
      %c0_14 = arith.constant 0 : index
      %c0_15 = arith.constant 0 : index
      %43 = vector.load %arg3[%c0_12, %c0_13, %c0_14, %c0_15] : memref<1x4x8x128xf32, #tpu.memory_space<vmem>>, vector<1x1x8x128xf32>
      %44 = vector.shape_cast %43 : vector<1x1x8x128xf32> to vector<8x128xf32>
      %45 = vector.shape_cast %42 : vector<8x128xf32> to vector<1x1x8x128xf32>
      tpu.vector_store %arg3[%c0_12, %c0_13, %c0_14, %c0_15], %45 {strides = array<i32>} : memref<1x4x8x128xf32, #tpu.memory_space<vmem>>, vector<1x1x8x128xf32>,
      %46 = vector.shape_cast %37 : vector<8x128xf32> to vector<1x8x128xf32>
      %cst_16 = arith.constant dense<0.000000e+00> : vector<8x128xf32>
      %47 = vector.multi_reduction <add>, %46, %cst_16 [0] : vector<1x8x128xf32> to vector<8x128xf32>
      %c0_17 = arith.constant 0 : index
      %c1 = arith.constant 1 : index
      %c0_18 = arith.constant 0 : index
      %c0_19 = arith.constant 0 : index
      %48 = vector.load %arg3[%c0_17, %c1, %c0_18, %c0_19] : memref<1x4x8x128xf32, #tpu.memory_space<vmem>>, vector<1x1x8x128xf32>
      %49 = vector.shape_cast %48 : vector<1x1x8x128xf32> to vector<8x128xf32>
      %50 = vector.shape_cast %47 : vector<8x128xf32> to vector<1x1x8x128xf32>
      tpu.vector_store %arg3[%c0_17, %c1, %c0_18, %c0_19], %50 {strides = array<i32>} : memref<1x4x8x128xf32, #tpu.memory_space<vmem>>, vector<1x1x8x128xf32>,
      %51 = vector.shape_cast %38 : vector<8x128xf32> to vector<1x8x128xf32>
      %cst_20 = arith.constant dense<0.000000e+00> : vector<8x128xf32>
      %52 = vector.multi_reduction <add>, %51, %cst_20 [0] : vector<1x8x128xf32> to vector<8x128xf32>
      %c0_21 = arith.constant 0 : index
      %c2 = arith.constant 2 : index
      %c0_22 = arith.constant 0 : index
      %c0_23 = arith.constant 0 : index
      %53 = vector.load %arg3[%c0_21, %c2, %c0_22, %c0_23] : memref<1x4x8x128xf32, #tpu.memory_space<vmem>>, vector<1x1x8x128xf32>
      %54 = vector.shape_cast %53 : vector<1x1x8x128xf32> to vector<8x128xf32>
      %55 = vector.shape_cast %52 : vector<8x128xf32> to vector<1x1x8x128xf32>
      tpu.vector_store %arg3[%c0_21, %c2, %c0_22, %c0_23], %55 {strides = array<i32>} : memref<1x4x8x128xf32, #tpu.memory_space<vmem>>, vector<1x1x8x128xf32>,
      %56 = vector.shape_cast %39 : vector<8x128xf32> to vector<1x8x128xf32>
      %cst_24 = arith.constant dense<0.000000e+00> : vector<8x128xf32>
      %57 = vector.multi_reduction <add>, %56, %cst_24 [0] : vector<1x8x128xf32> to vector<8x128xf32>
      %c0_25 = arith.constant 0 : index
      %c3 = arith.constant 3 : index
      %c0_26 = arith.constant 0 : index
      %c0_27 = arith.constant 0 : index
      %58 = vector.load %arg3[%c0_25, %c3, %c0_26, %c0_27] : memref<1x4x8x128xf32, #tpu.memory_space<vmem>>, vector<1x1x8x128xf32>
      %59 = vector.shape_cast %58 : vector<1x1x8x128xf32> to vector<8x128xf32>
      %60 = vector.shape_cast %57 : vector<8x128xf32> to vector<1x1x8x128xf32>
      tpu.vector_store %arg3[%c0_25, %c3, %c0_26, %c0_27], %60 {strides = array<i32>} : memref<1x4x8x128xf32, #tpu.memory_space<vmem>>, vector<1x1x8x128xf32>,
    } else {
    }
    return
  }
  func.func @transform_0(%arg0: i32) -> (i32, i32) {
    %c0_i32 = arith.constant 0 : i32
    %c0_i32_0 = arith.constant 0 : i32
    return %arg0, %c0_i32 : i32, i32
  }
  func.func @transform_1(%arg0: i32) -> (i32, i32) {
    %c0_i32 = arith.constant 0 : i32
    %c0_i32_0 = arith.constant 0 : i32
    return %arg0, %c0_i32 : i32, i32
  }
  func.func @transform_2(%arg0: i32) -> (i32, i32, i32, i32) {
    %c0_i32 = arith.constant 0 : i32
    %c0_i32_0 = arith.constant 0 : i32
    %c0_i32_1 = arith.constant 0 : i32
    %c0_i32_2 = arith.constant 0 : i32
    return %arg0, %c0_i32, %c0_i32_0, %c0_i32_1 : i32, i32, i32, i32
  }
}

</mosaic_0001>

<bundles_post_ra>
// kernel: tpu_custom_call.1
= control target key start
LH: loop header
LB: loop body
LE: loop exit
PB: predicated region body
PF: predicated region fallthrough
CT: control target
= control target key end

     0   :  { %7 = vsyncpa [#allocation3], 0  ;;  %s269_s0 = inlined_call_operand.hbm [shape: f32[8,128], index: 0, kind: input, shape index: {}]   ;;  %s270_s1 = inlined_call_operand.hbm [shape: f32[8,128], index: 1, kind: input, shape index: {}]   ;;  %s271_s2 = inlined_call_operand.hbm [shape: f32[1,4,8,128], index: 2, kind: output, shape index: {}]  }
   0x1   :  { %8 = vsyncpa [#allocation6], 0 }
   0x2   :  { %9 = vsyncpa [#allocation4], 0  ;;  %s212_s9 = smov [#allocation2]   ;;  %s213_s11 = smov [#allocation5]  }
   0x3   :  { %s16_s10 = sshll.u32 %s212_s9, 4  ;;  %s26_s12 = sshll.u32 %s213_s11, 4  ;;  %s17_s10 = int_to_ptr.vmem [resolvable:$true] %s16_s10  ;;  %s27_s12 = int_to_ptr.vmem [resolvable:$true] %s26_s12 }
   0x4   :  { %s140_s15 = scalar_lea.hbm %s269_s0, 128 }
   0x5   :  { %p141_p0 = scmp.ne.s32.totalorder %s269_s0, %s140_s15  ;;  %p144_p1 = scmp.lt.u32.totalorder %s140_s15, %s269_s0 }
   0x7   :  { %p146_p2 = pnand %p144_p1, %p141_p0 }
   0x9   :  { %149 = shalt.err (!%p146_p2)
}
   0xa   :  { %s150_s20 = scalar_lea.vmem %s17_s10, 128  ;;  %p155_p4 = scmp.lt.s32.totalorder %s17_s10, %s17_s10 }
   0xb   :  { %p151_p3 = scmp.ne.s32.totalorder %s17_s10, %s150_s20  ;;  %p156_p5 = scmp.lt.s32.totalorder %s150_s20, %s150_s20 }
   0xd   :  { %p157_p6 = por %p156_p5, %p155_p4 }
   0xf   :  { %p158_p7 = pnand %p157_p6, %p151_p3 }
  0x11   :  { %161 = shalt.err (!%p158_p7)
}
  0x12   :  { %19 = dma.hbm_to_vmem [thread:$0]  %s269_s0, 128, %s17_s10, [#allocation3]  }
  0x13   :  { %s162_s25 = scalar_lea.hbm %s270_s1, 128 }
  0x14   :  { %p163_p8 = scmp.ne.s32.totalorder %s270_s1, %s162_s25  ;;  %p166_p9 = scmp.lt.u32.totalorder %s162_s25, %s270_s1 }
  0x16   :  { %p168_p10 = pnand %p166_p9, %p163_p8 }
  0x18   :  { %171 = shalt.err (!%p168_p10)
}
  0x19   :  { %s172_s30 = scalar_lea.vmem %s27_s12, 128  ;;  %p177_p12 = scmp.lt.s32.totalorder %s27_s12, %s27_s12 }
  0x1a   :  { %p173_p11 = scmp.ne.s32.totalorder %s27_s12, %s172_s30  ;;  %p178_p13 = scmp.lt.s32.totalorder %s172_s30, %s172_s30 }
  0x1c   :  { %p179_p0 = por %p178_p13, %p177_p12 }
  0x1e   :  { %p180_p1 = pnand %p179_p0, %p173_p11 }
  0x20   :  { %183 = shalt.err (!%p180_p1)
}
  0x21   :  { %29 = dma.hbm_to_vmem [thread:$0]  %s270_s1, 128, %s27_s12, [#allocation6]  }
  0x22   :  { %206 = dma.done.wait [#allocation3], 128  }
  0x23   :  { %207 = vsyncadd [#allocation3], 4294967168 }
  0x24   :  { %208 = dma.done.wait [#allocation6], 128  }
  0x25   :  { %209 = vsyncadd [#allocation6], 4294967168  ;;  %v82_v0 = vlaneseq  ;;  %v36_v5 = vld [vmem:[#allocation2] sm:$0xff]  ;;  %v37_v7 = vld [vmem:[#allocation5] sm:$0xff]  ;;  %v214_v8 = vmov 0.0   ;;  %s215_s1 = smov [#allocation7]  }
  0x26   :  { %v124_v6 = vmul.f32 -1.442695, %v36_v5  ;;  %v58_v23 = vmul.f32 0.7, %v37_v7  ;;  %v56_v24 = vsub.f32 1.0, %v37_v7  ;;  %s111_s4 = sshll.u32 %s215_s1, 4  ;;  %s112_s4 = int_to_ptr.vmem [resolvable:$true] %s111_s4 }
  0x27   :  { %v83_v1 = vshrl.u32 %v82_v0, 7  ;;  %v85_v2 = vand.u32 127, %v82_v0  ;;  %s184_s5 = scalar_lea.vmem %s112_s4, 512  ;;  %p189_p3 = scmp.lt.s32.totalorder %s112_s4, %s112_s4 }
  0x28   :  { %132 = vpow2.f32 %v124_v6  ;;  %v59_v27 = vsub.f32 1.0, %v58_v23  ;;  %p185_p2 = scmp.ne.s32.totalorder %s112_s4, %s184_s5  ;;  %p190_p4 = scmp.lt.s32.totalorder %s184_s5, %s184_s5 }
  0x29   :  { %v86_v3 = vmul.u32 128, %v83_v1 }
  0x2a   :  { %p191_p5 = por %p190_p4, %p189_p3 }
  0x2b   :  { %v87_v4 = vadd.s32 %v86_v3, %v85_v2 }
  0x2c   :  { %p192_p6 = pnand %p191_p5, %p185_p2 }
  0x2d   :  { %vm88_vm0 = vcmp.lt.s32.totalorder %v87_v4, 512 }
  0x2e   :  { %v125_v9 = vsel %vm88_vm0, 1.0, %v214_v8 }
  0x2f   :  { %v92_v10 = vmul.f32 %v125_v9, %v37_v7 }
  0x31   :  { %102 = vst [vmem:[#allocation7 + $0x10] sm:$0xff] %v92_v10 }
  0x32   :  { %v133_v11 = vpop.eup %132 }
  0x33   :  { %v41_v12 = vadd.f32 1.0, %v133_v11 }
  0x35   :  { %134 = vrcp.f32 %v41_v12 }
  0x3f   :  { %v135_v13 = vpop.eup %134 }
  0x40   :  { %v44_v14 = vsub.f32 0.0, %v135_v13  ;;  %v91_v15 = vmul.f32 %v135_v13, %v125_v9  ;;  %v57_v29 = vmul.f32 %v135_v13, %v56_v24 }
  0x42   :  { %v45_v16 = vmul.f32 1.442695, %v44_v14  ;;  %v94_v17 = vmul.f32 %v92_v10, %v91_v15  ;;  %99 = vst [vmem:[#allocation7 + $0x8] sm:$0xff] %v91_v15 }
  0x44   :  { %96 = vst [vmem:[#allocation7] sm:$0xff] %v94_v17  ;;  %136 = vpow2.f32 %v45_v16 }
  0x4e   :  { %v137_v18 = vpop.eup %136 }
  0x4f   :  { %v47_v19 = vadd.f32 1.0, %v137_v18  ;;  %v50_v20 = vmul.f32 -0.5, %v137_v18  ;;  %v53_v22 = vand.u32 2147483647, %v137_v18 }
  0x51   :  { %138 = vlog2.f32 %v47_v19  ;;  %v51_v21 = vadd.f32 1.0, %v50_v20  ;;  %vm54_vm1 = vcmp.lt.f32.partialorder %v53_v22, 0.0004427343 }
  0x53   :  { %v52_v25 = vmul.f32 %v137_v18, %v51_v21 }
  0x5b   :  { %v139_v26 = vpop.eup %138 }
  0x5c   :  { %v49_v28 = vmul.f32 0.6931472, %v139_v26 }
  0x5e   :  { %v55_v30 = vsel %vm54_vm1, %v52_v25, %v49_v28 }
  0x5f   :  { %v60_v31 = vmul.f32 %v59_v27, %v55_v30 }
  0x61   :  { %v61_v32 = vadd.f32 %v60_v31, %v57_v29 }
  0x63   :  { %v93_v33 = vmul.f32 %v125_v9, %v61_v32 }
  0x65   :  { %105 = vst [vmem:[#allocation7 + $0x18] sm:$0xff] %v93_v33 }
  0x66   :  { %195 = shalt.err (!%p192_p6)
}
  0x67   :  { %s196_s8 = scalar_lea.hbm %s271_s2, 512 }
  0x68   :  { %p197_p7 = scmp.ne.s32.totalorder %s271_s2, %s196_s8  ;;  %p200_p8 = scmp.lt.u32.totalorder %s196_s8, %s271_s2 }
  0x6a   :  { %p202_p9 = pnand %p200_p8, %p197_p7 }
  0x6c   :  { %205 = shalt.err (!%p202_p9)
}
  0x6d   :  { %s216_s13 = smov 128   ;;  %s217_s14 = smov 8  }
  0x6e   :  { %117 = dma.vmem_to_hbm [thread:$0]  %s112_s4, 512, %s271_s2, [#allocation4], %s216_s13, %s216_s13, %s217_s14  }
  0x6f   :  { %210 = dma.done.wait [#allocation4], 512  }
  0x70   :  { %211 = vsyncadd [#allocation4], 4294966784 }
  0x71   :  { %121 = vsyncpa [#allocation3], 1 }
  0x72   :  { %122 = vsyncpa [#allocation6], 1 }
  0x73   :  { %123 = vsyncpa [#allocation4], 1 }

</bundles_post_ra>
